<compile_context>
chip_gen: v7x
topology: tpu7x:2x2x1
jax: 0.10.0
libtpu: 0.0.40
codegen_flags: <defaults>
</compile_context>

<pallas_src>
import functools

import jax
import jax.numpy as jnp
import numpy as np
from jax.experimental import pallas as pl
from jax.experimental.pallas import tpu as pltpu


def _pwce_kernel(cw_ref, logits_ref, tgt_ref, w_ref, out_ref, *,
                 n_tiles, tiles_per_group, rows_last, has_pad_tiles):
    # cw_ref:     (C, 128)      class_weights broadcast along lanes
    # logits_ref: (1, C, R, 128)
    # tgt_ref:    (1, R, 128)   int32
    # w_ref:      (1, R, 128)   raw weights (N==1) or gathered weights[t,s] (N==C)
    # out_ref:    (1, 1, R, 128) f32 resident accumulator per (n, group)
    g = pl.program_id(1)
    t = pl.program_id(2)

    @pl.when(t == 0)
    def _init():
        out_ref[...] = jnp.zeros_like(out_ref)

    C = logits_ref.shape[1]
    R = logits_ref.shape[2]
    tgt = tgt_ref[0]                                   # (R, 128) int32
    cw = cw_ref[...]                                   # (C, 128) f32

    # Pass 1: channel max (elementwise maxes between dense slabs).
    m = logits_ref[0, 0].astype(jnp.float32)
    for c in range(1, C):
        m = jnp.maximum(m, logits_ref[0, c].astype(jnp.float32))

    # Pass 2: sum(exp), target-channel z, target-channel class weight.
    z0 = logits_ref[0, 0].astype(jnp.float32) - m
    ssum = jnp.exp(z0)
    sel_z = z0                                         # overwritten unless target==0
    cw_sel = jnp.where(tgt == 0, cw[0], 0.0)           # (128,) row broadcasts over R
    for c in range(1, C):
        zc = logits_ref[0, c].astype(jnp.float32) - m
        ssum = ssum + jnp.exp(zc)
        is_c = tgt == c
        sel_z = jnp.where(is_c, zc, sel_z)
        cw_sel = jnp.where(is_c, cw[c], cw_sel)

    lse = jnp.log(ssum)
    w = w_ref[0].astype(jnp.float32)
    contrib = (cw_sel * w) * (lse - sel_z)             # == -eff_w * logp[target]

    has_partial_tile = rows_last != R
    if not (has_partial_tile or has_pad_tiles):
        # Grid covers the row range exactly: unconditional, unmasked accumulate.
        out_ref[...] += contrib[None, None]
    else:
        tile_idx = g * tiles_per_group + t
        if has_partial_tile:
            @pl.when(tile_idx < n_tiles - 1)
            def _full():
                out_ref[...] += contrib[None, None]

            @pl.when(tile_idx == n_tiles - 1)
            def _last():
                # Only the single partial tile pays the mask (garbage OOB rows
                # of the edge block are dropped by the select).
                row = jax.lax.broadcasted_iota(jnp.int32, contrib.shape, 0)
                out_ref[...] += jnp.where(row < rows_last, contrib, 0.0)[None, None]
        else:
            # Clamped padding tiles (group-split remainder) add nothing.
            @pl.when(tile_idx < n_tiles)
            def _real():
                out_ref[...] += contrib[None, None]


def _device_kind():
    try:
        return jax.devices()[0].device_kind.lower()
    except Exception:
        return ""


def pixelwise_cross_entropy_loss(logits, target, weights, class_weights=None,
                                 ignore_index=None, *, tile_rows=None,
                                 num_groups=None):
    """Forward pass of PixelWiseCrossEntropyLoss. logits: (N, C, D, H, W)."""
    assert target.shape == weights.shape
    # TODO(synk): ignore_index branch of expand_as_one_hot (mask + scatter of
    # ignore_index into the one-hot) not implemented; module default is None.
    assert ignore_index is None

    N, C = logits.shape[0], logits.shape[1]
    S = int(np.prod(logits.shape[2:]))
    total = N * C * S
    # The module's weights.unsqueeze(0).expand_as(input) only works when the
    # batch dim equals C (or 1) in PyTorch; mirror that requirement.
    assert N == C or N == 1

    if class_weights is None:
        class_weights = jnp.ones((C,), jnp.float32)
    cw = jnp.asarray(class_weights, jnp.float32).reshape(C, 1)
    cw_tab = jnp.broadcast_to(cw, (C, 128))            # tiny lane-broadcast table

    # Pixels as a dense (rows x 128) plane; pad S to a lane multiple if needed
    # (padded weights are 0 -> padded contributions are exactly 0).
    S_pad = ((S + 127) // 128) * 128
    rows = S_pad // 128

    logits3 = logits.reshape(N, C, S)
    tgt2 = target.reshape(N, S).astype(jnp.int32)
    w2 = weights.reshape(N, S)                          # keep input dtype
    if S_pad != S:
        pad = S_pad - S
        logits3 = jnp.pad(logits3, ((0, 0), (0, 0), (0, pad)))
        tgt2 = jnp.pad(tgt2, ((0, 0), (0, pad)))
        w2 = jnp.pad(w2, ((0, 0), (0, pad)))

    # Effective weight at (n, s) is weights[t, s] (N==C) or weights[0, s] (N==1);
    # class_weights[t] is applied in-kernel via the same target selects.
    if N == 1:
        w_sel = w2
    else:
        w_sel = jnp.take_along_axis(w2, tgt2, axis=0)   # (N, S_pad): weights[t, s]

    logits4 = logits3.reshape(N, C, rows, 128)
    tgt3 = tgt2.reshape(N, rows, 128)
    w3 = w_sel.reshape(N, rows, 128)

    # Row-tile size from a per-chip VMEM budget (double-buffered inputs + acc).
    kind = _device_kind()
    itemsize_x = jnp.dtype(logits.dtype).itemsize
    itemsize_w = jnp.dtype(weights.dtype).itemsize
    bytes_per_row = 128 * (2 * C * itemsize_x + 2 * 4 + 2 * itemsize_w + 2 * 4)
    budget = (12 if "v5" in kind else 24) * 1024 * 1024
    r_budget = max(8, min(4096, (budget // bytes_per_row) // 8 * 8))
    if tile_rows is not None:
        r_budget = max(8, (int(tile_rows) // 8) * 8)

    if rows <= r_budget:
        R = rows                                        # full dim (8,128 rule ok)
        n_tiles = 1
    else:
        R = r_budget                                    # multiple of 8
        n_tiles = -(-rows // R)

    # Group split only pays off on 2-TensorCore chips (v7x); keep N*G even there.
    if num_groups is None:
        two_tc = ("v7" in kind) or ("7x" in kind)
        num_groups = 2 if (two_tc and (N % 2 == 1)) else 1
    G = max(1, min(int(num_groups), n_tiles))
    tiles_per_group = -(-n_tiles // G)
    rows_last = rows - (n_tiles - 1) * R
    has_pad_tiles = (G * tiles_per_group) != n_tiles

    if has_pad_tiles:
        def row_block(g, t):
            # Clamp padding tiles onto a valid block; their add is gated off.
            return jnp.minimum(g * tiles_per_group + t, n_tiles - 1)
    else:
        def row_block(g, t):
            return g * tiles_per_group + t

    kernel = functools.partial(
        _pwce_kernel, n_tiles=n_tiles, tiles_per_group=tiles_per_group,
        rows_last=rows_last, has_pad_tiles=has_pad_tiles)

    partials = pl.pallas_call(
        kernel,
        out_shape=jax.ShapeDtypeStruct((N, G, R, 128), jnp.float32),
        grid=(N, G, tiles_per_group),
        in_specs=[
            pl.BlockSpec((C, 128), lambda n, g, t: (0, 0)),
            pl.BlockSpec((1, C, R, 128), lambda n, g, t: (n, 0, row_block(g, t), 0)),
            pl.BlockSpec((1, R, 128), lambda n, g, t: (n, row_block(g, t), 0)),
            pl.BlockSpec((1, R, 128), lambda n, g, t: (n, row_block(g, t), 0)),
        ],
        out_specs=pl.BlockSpec((1, 1, R, 128), lambda n, g, t: (n, g, 0, 0)),
        compiler_params=pltpu.CompilerParams(
            dimension_semantics=("parallel", "parallel", "arbitrary")),
    )(cw_tab, logits4, tgt3, w3)

    return jnp.sum(partials) / total                    # == .mean()


def _reference(logits, target, weights, class_weights=None):
    # Pure-JAX mirror of the PyTorch forward (for verification only).
    C = logits.shape[1]
    logp = jax.nn.log_softmax(logits.astype(jnp.float32), axis=1)
    onehot = jnp.transpose(jax.nn.one_hot(target, C, dtype=jnp.float32),
                           (0, 4, 1, 2, 3))
    w = jnp.broadcast_to(weights[None].astype(jnp.float32), logits.shape)
    if class_weights is None:
        class_weights = jnp.ones((C,), jnp.float32)
    cw = class_weights.reshape(1, C, 1, 1, 1)
    return jnp.mean(-cw * w * onehot * logp)


if __name__ == "__main__":
    key = jax.random.PRNGKey(0)
    k1, k2, k3, k4, k5, k6 = jax.random.split(key, 6)

    loss_fn = jax.jit(pixelwise_cross_entropy_loss)

    # Case 1: N == C (the module's weights.unsqueeze(0).expand_as(input) needs
    # batch == C in PyTorch).
    N, C, D, H, W = 4, 4, 4, 16, 16
    logits = jax.random.normal(k1, (N, C, D, H, W), dtype=jnp.float32)
    target = jax.random.randint(k2, (N, D, H, W), 0, C)
    weights = jax.random.uniform(k3, (N, D, H, W), dtype=jnp.float32)
    class_weights = jnp.linspace(0.5, 1.5, C, dtype=jnp.float32)

    loss = jax.block_until_ready(loss_fn(logits, target, weights, class_weights))
    ref = _reference(logits, target, weights, class_weights)
    assert np.allclose(np.asarray(loss), np.asarray(ref), rtol=1e-5, atol=1e-6), (loss, ref)

    # Case 2: N == 1 (weights broadcast over channels; class weights applied
    # entirely in-kernel, no wrapper pre-pass).
    logits1 = jax.random.normal(k4, (1, C, D, H, W), dtype=jnp.float32)
    target1 = jax.random.randint(k5, (1, D, H, W), 0, C)
    weights1 = jax.random.uniform(k6, (1, D, H, W), dtype=jnp.float32)
    loss1 = jax.block_until_ready(loss_fn(logits1, target1, weights1, class_weights))
    ref1 = _reference(logits1, target1, weights1, class_weights)
    assert np.allclose(np.asarray(loss1), np.asarray(ref1), rtol=1e-5, atol=1e-6), (loss1, ref1)

    print("KERNEL_OK")
</pallas_src>

<mosaic_0001>
module attributes {stable_mosaic.version = 11 : i64} {
  func.func private @main(%arg0: i32) attributes {dimension_semantics = [#tpu.dimension_semantics<core_parallel>], iteration_bounds = array<i64: 2>, tpu.core_type = #tpu.core_type<sc_scalar_subcore>, window_params = []} {
    return
  }
}

module attributes {stable_mosaic.version = 11 : i64} {
  func.func private @main(%arg0: i32) attributes {dimension_semantics = [#tpu.dimension_semantics<core_parallel>], iteration_bounds = array<i64: 2>, tpu.core_type = #tpu.core_type<sc_scalar_subcore>, window_params = []} {
    return
  }
}

module attributes {stable_mosaic.version = 11 : i64} {
  func.func @_pwce_kernel(%arg0: i32, %arg1: i32, %arg2: i32, %arg3: memref<4x128xf32, #tpu.memory_space<vmem>>, %arg4: memref<1x4x8x128xf32, #tpu.memory_space<vmem>>, %arg5: memref<1x8x128xi32, #tpu.memory_space<vmem>>, %arg6: memref<1x8x128xf32, #tpu.memory_space<vmem>>, %arg7: memref<1x1x8x128xf32, #tpu.memory_space<vmem>>) attributes {dimension_semantics = [#tpu.dimension_semantics<parallel>, #tpu.dimension_semantics<parallel>, #tpu.dimension_semantics<arbitrary>], iteration_bounds = array<i64: 4, 1, 1>, scalar_prefetch = 0 : i64, scratch_operands = 0 : i64, tpu.core_type = #tpu.core_type<tc>, window_params = [{pipeline_mode = #tpu.pipeline_mode<synchronous>, transform_indices = @transform_0, window_bounds = array<i64: 4, 128>}, {transform_indices = @transform_1, window_bounds = array<i64: 1, 4, 8, 128>}, {transform_indices = @transform_2, window_bounds = array<i64: 1, 8, 128>}, {transform_indices = @transform_3, window_bounds = array<i64: 1, 8, 128>}, {transform_indices = @transform_4, window_bounds = array<i64: 1, 1, 8, 128>}]} {
    %c0_i32 = arith.constant 0 : i32
    %0 = arith.cmpi eq, %arg2, %c0_i32 : i32
    %1 = arith.extui %0 : i1 to i32
    %c0_i32_0 = arith.constant 0 : i32
    %2 = arith.cmpi ne, %1, %c0_i32_0 : i32
    scf.if %2 {
      %cst_46 = arith.constant 0.000000e+00 : f32
      %78 = vector.broadcast %cst_46 : f32 to vector<1x1x8x128xf32>
      %c0_47 = arith.constant 0 : index
      %c0_48 = arith.constant 0 : index
      %c0_49 = arith.constant 0 : index
      %c0_50 = arith.constant 0 : index
      %79 = vector.load %arg7[%c0_47, %c0_48, %c0_49, %c0_50] : memref<1x1x8x128xf32, #tpu.memory_space<vmem>>, vector<1x1x8x128xf32>
      tpu.vector_store %arg7[%c0_47, %c0_48, %c0_49, %c0_50], %78 {strides = array<i32>} : memref<1x1x8x128xf32, #tpu.memory_space<vmem>>, vector<1x1x8x128xf32>,
    } else {
    }
    %c0 = arith.constant 0 : index
    %c0_1 = arith.constant 0 : index
    %c0_2 = arith.constant 0 : index
    %3 = vector.load %arg5[%c0, %c0_1, %c0_2] : memref<1x8x128xi32, #tpu.memory_space<vmem>>, vector<1x8x128xi32>
    %4 = vector.shape_cast %3 : vector<1x8x128xi32> to vector<8x128xi32>
    %c0_3 = arith.constant 0 : index
    %c0_4 = arith.constant 0 : index
    %5 = vector.load %arg3[%c0_3, %c0_4] : memref<4x128xf32, #tpu.memory_space<vmem>>, vector<4x128xf32>
    %c0_5 = arith.constant 0 : index
    %c0_6 = arith.constant 0 : index
    %c0_7 = arith.constant 0 : index
    %c0_8 = arith.constant 0 : index
    %6 = vector.load %arg4[%c0_5, %c0_6, %c0_7, %c0_8] : memref<1x4x8x128xf32, #tpu.memory_space<vmem>>, vector<1x1x8x128xf32>
    %7 = vector.shape_cast %6 : vector<1x1x8x128xf32> to vector<8x128xf32>
    %c0_9 = arith.constant 0 : index
    %c1 = arith.constant 1 : index
    %c0_10 = arith.constant 0 : index
    %c0_11 = arith.constant 0 : index
    %8 = vector.load %arg4[%c0_9, %c1, %c0_10, %c0_11] : memref<1x4x8x128xf32, #tpu.memory_space<vmem>>, vector<1x1x8x128xf32>
    %9 = vector.shape_cast %8 : vector<1x1x8x128xf32> to vector<8x128xf32>
    %10 = arith.maximumf %7, %9 : vector<8x128xf32>
    %c0_12 = arith.constant 0 : index
    %c2 = arith.constant 2 : index
    %c0_13 = arith.constant 0 : index
    %c0_14 = arith.constant 0 : index
    %11 = vector.load %arg4[%c0_12, %c2, %c0_13, %c0_14] : memref<1x4x8x128xf32, #tpu.memory_space<vmem>>, vector<1x1x8x128xf32>
    %12 = vector.shape_cast %11 : vector<1x1x8x128xf32> to vector<8x128xf32>
    %13 = arith.maximumf %10, %12 : vector<8x128xf32>
    %c0_15 = arith.constant 0 : index
    %c3 = arith.constant 3 : index
    %c0_16 = arith.constant 0 : index
    %c0_17 = arith.constant 0 : index
    %14 = vector.load %arg4[%c0_15, %c3, %c0_16, %c0_17] : memref<1x4x8x128xf32, #tpu.memory_space<vmem>>, vector<1x1x8x128xf32>
    %15 = vector.shape_cast %14 : vector<1x1x8x128xf32> to vector<8x128xf32>
    %16 = arith.maximumf %13, %15 : vector<8x128xf32>
    %c0_18 = arith.constant 0 : index
    %c0_19 = arith.constant 0 : index
    %c0_20 = arith.constant 0 : index
    %c0_21 = arith.constant 0 : index
    %17 = vector.load %arg4[%c0_18, %c0_19, %c0_20, %c0_21] : memref<1x4x8x128xf32, #tpu.memory_space<vmem>>, vector<1x1x8x128xf32>
    %18 = vector.shape_cast %17 : vector<1x1x8x128xf32> to vector<8x128xf32>
    %19 = arith.subf %18, %16 : vector<8x128xf32>
    %20 = math.exp %19 : vector<8x128xf32>
    %c0_i32_22 = arith.constant 0 : i32
    %21 = vector.broadcast %c0_i32_22 : i32 to vector<8x128xi32>
    %22 = arith.cmpi eq, %4, %21 : vector<8x128xi32>
    %23 = vector.extract_strided_slice %5 {offsets = [0, 0], sizes = [1, 128], strides = [1, 1]} : vector<4x128xf32> to vector<1x128xf32>
    %24 = vector.shape_cast %23 : vector<1x128xf32> to vector<128xf32>
    %cst = arith.constant 0.000000e+00 : f32
    %25 = vector.shape_cast %24 : vector<128xf32> to vector<1x128xf32>
    %26 = vector.broadcast %25 : vector<1x128xf32> to vector<8x128xf32>
    %27 = vector.broadcast %cst : f32 to vector<8x128xf32>
    %28 = arith.select %22, %26, %27 : vector<8x128xi1>, vector<8x128xf32>
    %c0_23 = arith.constant 0 : index
    %c1_24 = arith.constant 1 : index
    %c0_25 = arith.constant 0 : index
    %c0_26 = arith.constant 0 : index
    %29 = vector.load %arg4[%c0_23, %c1_24, %c0_25, %c0_26] : memref<1x4x8x128xf32, #tpu.memory_space<vmem>>, vector<1x1x8x128xf32>
    %30 = vector.shape_cast %29 : vector<1x1x8x128xf32> to vector<8x128xf32>
    %31 = arith.subf %30, %16 : vector<8x128xf32>
    %32 = math.exp %31 : vector<8x128xf32>
    %33 = arith.addf %20, %32 : vector<8x128xf32>
    %c1_i32 = arith.constant 1 : i32
    %34 = vector.broadcast %c1_i32 : i32 to vector<8x128xi32>
    %35 = arith.cmpi eq, %4, %34 : vector<8x128xi32>
    %36 = arith.select %35, %31, %19 : vector<8x128xi1>, vector<8x128xf32>
    %37 = vector.extract_strided_slice %5 {offsets = [1, 0], sizes = [1, 128], strides = [1, 1]} : vector<4x128xf32> to vector<1x128xf32>
    %38 = vector.shape_cast %37 : vector<1x128xf32> to vector<128xf32>
    %39 = vector.shape_cast %38 : vector<128xf32> to vector<1x128xf32>
    %40 = vector.broadcast %39 : vector<1x128xf32> to vector<8x128xf32>
    %41 = arith.select %35, %40, %28 : vector<8x128xi1>, vector<8x128xf32>
    %c0_27 = arith.constant 0 : index
    %c2_28 = arith.constant 2 : index
    %c0_29 = arith.constant 0 : index
    %c0_30 = arith.constant 0 : index
    %42 = vector.load %arg4[%c0_27, %c2_28, %c0_29, %c0_30] : memref<1x4x8x128xf32, #tpu.memory_space<vmem>>, vector<1x1x8x128xf32>
    %43 = vector.shape_cast %42 : vector<1x1x8x128xf32> to vector<8x128xf32>
    %44 = arith.subf %43, %16 : vector<8x128xf32>
    %45 = math.exp %44 : vector<8x128xf32>
    %46 = arith.addf %33, %45 : vector<8x128xf32>
    %c2_i32 = arith.constant 2 : i32
    %47 = vector.broadcast %c2_i32 : i32 to vector<8x128xi32>
    %48 = arith.cmpi eq, %4, %47 : vector<8x128xi32>
    %49 = arith.select %48, %44, %36 : vector<8x128xi1>, vector<8x128xf32>
    %50 = vector.extract_strided_slice %5 {offsets = [2, 0], sizes = [1, 128], strides = [1, 1]} : vector<4x128xf32> to vector<1x128xf32>
    %51 = vector.shape_cast %50 : vector<1x128xf32> to vector<128xf32>
    %52 = vector.shape_cast %51 : vector<128xf32> to vector<1x128xf32>
    %53 = vector.broadcast %52 : vector<1x128xf32> to vector<8x128xf32>
    %54 = arith.select %48, %53, %41 : vector<8x128xi1>, vector<8x128xf32>
    %c0_31 = arith.constant 0 : index
    %c3_32 = arith.constant 3 : index
    %c0_33 = arith.constant 0 : index
    %c0_34 = arith.constant 0 : index
    %55 = vector.load %arg4[%c0_31, %c3_32, %c0_33, %c0_34] : memref<1x4x8x128xf32, #tpu.memory_space<vmem>>, vector<1x1x8x128xf32>
    %56 = vector.shape_cast %55 : vector<1x1x8x128xf32> to vector<8x128xf32>
    %57 = arith.subf %56, %16 : vector<8x128xf32>
    %58 = math.exp %57 : vector<8x128xf32>
    %59 = arith.addf %46, %58 : vector<8x128xf32>
    %c3_i32 = arith.constant 3 : i32
    %60 = vector.broadcast %c3_i32 : i32 to vector<8x128xi32>
    %61 = arith.cmpi eq, %4, %60 : vector<8x128xi32>
    %62 = arith.select %61, %57, %49 : vector<8x128xi1>, vector<8x128xf32>
    %63 = vector.extract_strided_slice %5 {offsets = [3, 0], sizes = [1, 128], strides = [1, 1]} : vector<4x128xf32> to vector<1x128xf32>
    %64 = vector.shape_cast %63 : vector<1x128xf32> to vector<128xf32>
    %65 = vector.shape_cast %64 : vector<128xf32> to vector<1x128xf32>
    %66 = vector.broadcast %65 : vector<1x128xf32> to vector<8x128xf32>
    %67 = arith.select %61, %66, %54 : vector<8x128xi1>, vector<8x128xf32>
    %68 = math.log %59 : vector<8x128xf32>
    %c0_35 = arith.constant 0 : index
    %c0_36 = arith.constant 0 : index
    %c0_37 = arith.constant 0 : index
    %69 = vector.load %arg6[%c0_35, %c0_36, %c0_37] : memref<1x8x128xf32, #tpu.memory_space<vmem>>, vector<1x8x128xf32>
    %70 = vector.shape_cast %69 : vector<1x8x128xf32> to vector<8x128xf32>
    %71 = arith.mulf %67, %70 : vector<8x128xf32>
    %72 = arith.subf %68, %62 : vector<8x128xf32>
    %73 = arith.mulf %71, %72 : vector<8x128xf32>
    %c0_38 = arith.constant 0 : index
    %c0_39 = arith.constant 0 : index
    %c0_40 = arith.constant 0 : index
    %c0_41 = arith.constant 0 : index
    %74 = vector.load %arg7[%c0_38, %c0_39, %c0_40, %c0_41] : memref<1x1x8x128xf32, #tpu.memory_space<vmem>>, vector<1x1x8x128xf32>
    %75 = vector.shape_cast %73 : vector<8x128xf32> to vector<1x1x8x128xf32>
    %76 = arith.addf %74, %75 : vector<1x1x8x128xf32>
    %c0_42 = arith.constant 0 : index
    %c0_43 = arith.constant 0 : index
    %c0_44 = arith.constant 0 : index
    %c0_45 = arith.constant 0 : index
    %77 = vector.load %arg7[%c0_42, %c0_43, %c0_44, %c0_45] : memref<1x1x8x128xf32, #tpu.memory_space<vmem>>, vector<1x1x8x128xf32>
    tpu.vector_store %arg7[%c0_42, %c0_43, %c0_44, %c0_45], %76 {strides = array<i32>} : memref<1x1x8x128xf32, #tpu.memory_space<vmem>>, vector<1x1x8x128xf32>,
    return
  }
  func.func @transform_0(%arg0: i32, %arg1: i32, %arg2: i32) -> (i32, i32) {
    %c0_i32 = arith.constant 0 : i32
    %c0_i32_0 = arith.constant 0 : i32
    %c0_i32_1 = arith.constant 0 : i32
    return %c0_i32, %c0_i32_0 : i32, i32
  }
  func.func @transform_1(%arg0: i32, %arg1: i32, %arg2: i32) -> (i32, i32, i32, i32) {
    %c1_i32 = arith.constant 1 : i32
    %0 = arith.muli %arg1, %c1_i32 : i32
    %1 = arith.addi %0, %arg2 : i32
    %c0_i32 = arith.constant 0 : i32
    %c0_i32_0 = arith.constant 0 : i32
    %c0_i32_1 = arith.constant 0 : i32
    return %arg0, %c0_i32, %1, %c0_i32_0 : i32, i32, i32, i32
  }
  func.func @transform_2(%arg0: i32, %arg1: i32, %arg2: i32) -> (i32, i32, i32) {
    %c1_i32 = arith.constant 1 : i32
    %0 = arith.muli %arg1, %c1_i32 : i32
    %1 = arith.addi %0, %arg2 : i32
    %c0_i32 = arith.constant 0 : i32
    %c0_i32_0 = arith.constant 0 : i32
    return %arg0, %1, %c0_i32 : i32, i32, i32
  }
  func.func @transform_3(%arg0: i32, %arg1: i32, %arg2: i32) -> (i32, i32, i32) {
    %c1_i32 = arith.constant 1 : i32
    %0 = arith.muli %arg1, %c1_i32 : i32
    %1 = arith.addi %0, %arg2 : i32
    %c0_i32 = arith.constant 0 : i32
    %c0_i32_0 = arith.constant 0 : i32
    return %arg0, %1, %c0_i32 : i32, i32, i32
  }
  func.func @transform_4(%arg0: i32, %arg1: i32, %arg2: i32) -> (i32, i32, i32, i32) {
    %c0_i32 = arith.constant 0 : i32
    %c0_i32_0 = arith.constant 0 : i32
    %c0_i32_1 = arith.constant 0 : i32
    return %arg0, %arg1, %c0_i32, %c0_i32_0 : i32, i32, i32, i32
  }
}

</mosaic_0001>

<bundles_post_ra>
// kernel: pixelwise_cross_entropy_loss.1
= control target key start
LH: loop header
LB: loop body
LE: loop exit
PB: predicated region body
PF: predicated region fallthrough
CT: control target
= control target key end

     0   :  { %s589_s15 = smov 0   ;;  %s591_s16 = smov 0   ;;  %s636_s0 = inlined_call_operand.vmem [shape: f32[4,128], index: 0, kind: input, shape index: {}]   ;;  %s637_s1 = inlined_call_operand.vmem [shape: f32[4,4,8,128], index: 1, kind: input, shape index: {}]   ;;  %s638_s2 = inlined_call_operand.vmem [shape: s32[4,8,128], index: 2, kind: input, shape index: {}]   ;;  %s639_s3 = inlined_call_operand.vmem [shape: f32[4,8,128], index: 3, kind: input, shape index: {}]   ;;  %s640_s4 = inlined_call_operand.vmem [shape: f32[4,1,8,128], index: 4, kind: output, shape index: {}]  }
   0x1   :  { %s593_s17 = smov 0  }
   0x2 LB: > { %s33_s18 = sadd.s32 1, %s558_s16  ;;  %p493_p0 = scmp.ge.s32.totalorder %s562_s17, 1  ;;  %s562_s17 = sphi %s593_s17, %s14_s17   ;;  %s558_s16 = sphi %s591_s16, %s642_s16   ;;  %s554_s15 = sphi %s589_s15, %s641_s15  }
   0x3   : > { %p35_p1 = scmp.ge.s32.totalorder %s33_s18, 4  ;;  %p228_p2 = scmp.lt.s32.totalorder %s562_s17, 5 }
   0x5   : > { %s644_s18 = smov (%p35_p1, %s33_s18), 0  ;;  %p229_p3 = pnand %p493_p0, %p228_p2 }
   0x6   : > { %p277_p4 = scmp.lt.s32.totalorder (!%p229_p3), %s554_s15, 3  ;;  %v332_v15 = vlaneseq (!%p229_p3)  ;;  %v317_v19 = vld [vmem:[%s636_s0] sm:$0xf] (!%p229_p3) }
   0x7   : > { %232 = sbr.rel (%p229_p3) target bundleno = 64 (0x40), region = 36 }
   0x8   : > { %v333_v16 = vshrl.u32 (!%p229_p3), %v332_v15, 7 }
   0xa   : > { %v334_v17 = vsub.s32 (!%p229_p3), 0, %v333_v16  ;;  %v345_v23 = vsub.s32 (!%p229_p3), 1, %v333_v16  ;;  %v356_v28 = vsub.s32 (!%p229_p3), 2, %v333_v16  ;;  %v367_v32 = vsub.s32 (!%p229_p3), 3, %v333_v16 }
   0xc   : > { %v335_v26 = vrot.slane (!%p229_p3), %v317_v19, %v334_v17  ;;  %v346_v29 = vrot.slane (!%p229_p3), %v317_v19, %v345_v23  ;;  %v357_v33 = vrot.slane (!%p229_p3), %v317_v19, %v356_v28  ;;  %v368_v36 = vrot.slane (!%p229_p3), %v317_v19, %v367_v32 }
   0xe   : > { %s646_s15 = smov (!%p277_p4, %s554_s15), 3 }
   0xf   : > { %s504_s19 = sshll.u32 %s646_s15, 5  ;;  %s610_s23 = sshll.u32 %s646_s15, 3 }
  0x10   : > { %s284_s22 = scalar_lea.vmem %s637_s1, %s504_s19  ;;  %s293_s26 = scalar_lea.vmem %s638_s2, %s610_s23 }
  0x11   : > { %v318_v0 = vld [vmem:[%s284_s22] sm:$0xff]  ;;  %v499_v1 = vld [vmem:[%s284_s22 + $0x8] sm:$0xff]  ;;  %v500_v3 = vld [vmem:[%s284_s22 + $0x10] sm:$0xff]  ;;  %s302_s5 = scalar_lea.vmem %s639_s3, %s610_s23  ;;  %s310_s8 = scalar_lea.vmem %s640_s4, %s610_s23 }
  0x12   : > { %v321_v2 = vmax.f32 %v318_v0, %v499_v1  ;;  %v501_v4 = vld [vmem:[%s284_s22 + $0x18] sm:$0xff]  ;;  %v316_v21 = vld [vmem:[%s293_s26] sm:$0xff] }
  0x13   : > { %vm331_vm0 = vcmp.eq.s32.totalorder %v316_v21, 0  ;;  %vm341_vm1 = vcmp.eq.s32.totalorder %v316_v21, 1  ;;  %vm352_vm2 = vcmp.eq.s32.totalorder %v316_v21, 2  ;;  %vm363_vm3 = vcmp.eq.s32.totalorder %v316_v21, 3  ;;  %v372_v40 = vld [vmem:[%s302_s5] sm:$0xff] }
  0x14   : > { %v324_v5 = vmax.f32 %v321_v2, %v500_v3  ;;  %v336_v31 = vsel %vm331_vm0, %v335_v26, 0.0 }
  0x15   : > { %v347_v34 = vsel %vm341_vm1, %v346_v29, %v336_v31 }
  0x16   : > { %v327_v6 = vmax.f32 %v324_v5, %v501_v4  ;;  %v358_v37 = vsel %vm352_vm2, %v357_v33, %v347_v34 }
  0x17   : > { %v369_v39 = vsel %vm363_vm3, %v368_v36, %v358_v37 }
  0x18   : > { %v328_v7 = vsub.f32 %v318_v0, %v327_v6  ;;  %v337_v8 = vsub.f32 %v499_v1, %v327_v6  ;;  %v348_v9 = vsub.f32 %v500_v3, %v327_v6  ;;  %v359_v10 = vsub.f32 %v501_v4, %v327_v6 }
  0x19   : > { %v373_v43 = vmul.f32 %v372_v40, %v369_v39 }
  0x1a   : > { %v329_v11 = vmul.f32 1.442695, %v328_v7  ;;  %v338_v12 = vmul.f32 1.442695, %v337_v8  ;;  %v349_v13 = vmul.f32 1.442695, %v348_v9  ;;  %v342_v35 = vsel %vm341_vm1, %v337_v8, %v328_v7 }
  0x1b   : > { %v360_v14 = vmul.f32 1.442695, %v359_v10  ;;  %v353_v38 = vsel %vm352_vm2, %v348_v9, %v342_v35 }
  0x1c   : > { %530 = vpow2.f32 %v329_v11  ;;  %v364_v42 = vsel %vm363_vm3, %v359_v10, %v353_v38 }
  0x1d   : > { %532 = vpow2.f32 %v338_v12 }
  0x1e   : > { %534 = vpow2.f32 %v349_v13 }
  0x1f   : > { %536 = vpow2.f32 %v360_v14 }
  0x26   : > { %v531_v18 = vpop.eup %530 }
  0x27   : > { %v533_v20 = vpop.eup %532 }
  0x28   : > { %v535_v22 = vpop.eup %534  ;;  %v340_v24 = vadd.f32 %v533_v20, %v531_v18 }
  0x29   : > { %v537_v25 = vpop.eup %536 }
  0x2a   : > { %v351_v27 = vadd.f32 %v535_v22, %v340_v24 }
  0x2c   : > { %v362_v30 = vadd.f32 %v537_v25, %v351_v27 }
  0x2e   : > { %538 = vlog2.f32 %v362_v30 }
  0x38   : > { %v539_v41 = vpop.eup %538 }
  0x39   : > { %v371_v44 = vmul.f32 0.6931472, %v539_v41 }
  0x3b   : > { %v374_v45 = vsub.f32 %v371_v44, %v364_v42 }
  0x3d   : > { %v375_v46 = vmul.f32 %v374_v45, %v373_v43 }
  0x3f   : > { %378 = vst [vmem:[%s310_s8] sm:$0xff] %v375_v46 }
  0x40 PF: > { %s14_s17 = sadd.s32 1, %s562_s17   ;;  %s641_s15 = smov %s558_s16 }
  0x41   : > { %p11_p5 = scmp.ge.s32.totalorder %s14_s17, 6   ;;  %s642_s16 = smov %s644_s18 }
  0x43   :  { %13 = sbr.rel (!%p11_p5) target bundleno = 2 (0x2), region = 79 }

</bundles_post_ra>
